<compile_context>
chip_gen: v6e
topology: v6e:2x2x1
jax: 0.10.0
libtpu: 0.0.40
codegen_flags: <defaults>
</compile_context>

<pallas_src>
import functools

import jax
import jax.numpy as jnp
from jax.experimental import pallas as pl
from jax.experimental.pallas import tpu as pltpu

IN_FEATURES = 3
HIDDEN = 9
OUT_FEATURES = 2


def mlp_kernel(x_ref, w1_ref, b1_ref, w2_ref, b2_ref, o_ref):
    # fc1 (no activation in this module)
    x = x_ref[...]
    h = jnp.dot(x, w1_ref[...], preferred_element_type=jnp.float32) + b1_ref[...]
    # fc2
    o_ref[...] = (
        jnp.dot(h, w2_ref[...], preferred_element_type=jnp.float32) + b2_ref[...]
    ).astype(o_ref.dtype)


def _round_up(n, m):
    return ((n + m - 1) // m) * m


def prepare_params(torch_style_params):
    """One-time conversion from torch nn.Linear layout (out,in)/(out,) to the
    kernel layout [in,out] / [1,out].  Called outside the per-forward path."""
    w1, b1, w2, b2 = torch_style_params
    return (
        jnp.asarray(w1, jnp.float32).T,              # [3, 9]
        jnp.asarray(b1, jnp.float32).reshape(1, -1),  # [1, 9]
        jnp.asarray(w2, jnp.float32).T,              # [9, 2]
        jnp.asarray(b2, jnp.float32).reshape(1, -1),  # [1, 2]
    )


@functools.partial(jax.jit, static_argnames=("batch_tile",))
def net_mia_attack_forward(x, prepared_params, batch_tile=512):
    """x: [..., 3] float; returns [B, 2] float32 where B = prod(leading dims)."""
    w1t, b1r, w2t, b2r = prepared_params
    xf = x.reshape(-1, IN_FEATURES).astype(jnp.float32)
    B = xf.shape[0]

    # Tile the batch; pad B up so the block shape is (8,128)-legal and the grid
    # divides evenly (padded rows are pure extra rows, never mixed with real ones).
    tb = batch_tile if B >= batch_tile else _round_up(B, 8)
    bp = _round_up(B, tb)
    if bp != B:
        xf = jnp.pad(xf, ((0, bp - B), (0, 0)))

    grid = (bp // tb,)
    const = lambda shape: pl.BlockSpec(shape, lambda i: (0, 0))

    out = pl.pallas_call(
        mlp_kernel,
        out_shape=jax.ShapeDtypeStruct((bp, OUT_FEATURES), jnp.float32),
        grid=grid,
        in_specs=[
            pl.BlockSpec((tb, IN_FEATURES), lambda i: (i, 0)),  # x: streamed per tile
            const((IN_FEATURES, HIDDEN)),                       # w1t: VMEM-resident
            const((1, HIDDEN)),                                 # b1
            const((HIDDEN, OUT_FEATURES)),                      # w2t
            const((1, OUT_FEATURES)),                           # b2
        ],
        out_specs=pl.BlockSpec((tb, OUT_FEATURES), lambda i: (i, 0)),
        compiler_params=pltpu.CompilerParams(
            dimension_semantics=("parallel",),
        ),
    )(xf, w1t, b1r, w2t, b2r)
    return out[:B]


def init_params(key):
    """Deterministic init mimicking nn.Linear default (uniform +/- 1/sqrt(fan_in)),
    produced in torch layout (out_features, in_features)."""
    def linear_init(k, out_f, in_f):
        kw, kb = jax.random.split(k)
        bound = 1.0 / jnp.sqrt(float(in_f))
        w = jax.random.uniform(kw, (out_f, in_f), jnp.float32, -bound, bound)
        b = jax.random.uniform(kb, (out_f,), jnp.float32, -bound, bound)
        return w, b

    k1, k2 = jax.random.split(key)
    w1, b1 = linear_init(k1, HIDDEN, IN_FEATURES)
    w2, b2 = linear_init(k2, OUT_FEATURES, HIDDEN)
    return (w1, b1, w2, b2)


def reference_forward(x, torch_style_params):
    """Pure-JAX reference matching the PyTorch forward exactly."""
    w1, b1, w2, b2 = torch_style_params
    h = x.reshape(-1, IN_FEATURES)
    h = h @ w1.T + b1
    return h @ w2.T + b2


if __name__ == "__main__":
    key = jax.random.PRNGKey(0)
    kx, kp = jax.random.split(key)

    # Small batch of 3-feature inputs, consistent with NetMIAAttack's fc1 = Linear(3, 9).
    x = jax.random.normal(kx, (2, IN_FEATURES), jnp.float32)
    torch_params = init_params(kp)
    params = prepare_params(torch_params)  # hoisted transposes (one-time)

    out = net_mia_attack_forward(x, params)
    out = jax.block_until_ready(out)

    ref = reference_forward(x, torch_params)
    assert out.shape == (2, OUT_FEATURES), out.shape
    assert jnp.allclose(out, ref, atol=1e-4, rtol=1e-4), "mismatch vs reference"

    print("KERNEL_OK")
</pallas_src>

<mosaic_0001>
module attributes {stable_mosaic.version = 11 : i64} {
  func.func @mlp_kernel(%arg0: i32, %arg1: memref<8x3xf32, #tpu.memory_space<vmem>>, %arg2: memref<3x9xf32, #tpu.memory_space<vmem>>, %arg3: memref<1x9xf32, #tpu.memory_space<vmem>>, %arg4: memref<9x2xf32, #tpu.memory_space<vmem>>, %arg5: memref<1x2xf32, #tpu.memory_space<vmem>>, %arg6: memref<8x2xf32, #tpu.memory_space<vmem>>) attributes {dimension_semantics = [#tpu.dimension_semantics<parallel>], iteration_bounds = array<i64: 1>, scalar_prefetch = 0 : i64, scratch_operands = 0 : i64, tpu.core_type = #tpu.core_type<tc>, window_params = [{transform_indices = @transform_0, window_bounds = array<i64: 8, 3>}, {pipeline_mode = #tpu.pipeline_mode<synchronous>, transform_indices = @transform_1, window_bounds = array<i64: 3, 9>}, {pipeline_mode = #tpu.pipeline_mode<synchronous>, transform_indices = @transform_2, window_bounds = array<i64: 1, 9>}, {pipeline_mode = #tpu.pipeline_mode<synchronous>, transform_indices = @transform_3, window_bounds = array<i64: 9, 2>}, {pipeline_mode = #tpu.pipeline_mode<synchronous>, transform_indices = @transform_4, window_bounds = array<i64: 1, 2>}, {transform_indices = @transform_5, window_bounds = array<i64: 8, 2>}]} {
    %c0 = arith.constant 0 : index
    %c0_0 = arith.constant 0 : index
    %0 = vector.load %arg1[%c0, %c0_0] : memref<8x3xf32, #tpu.memory_space<vmem>>, vector<8x3xf32>
    %c0_1 = arith.constant 0 : index
    %c0_2 = arith.constant 0 : index
    %1 = vector.load %arg2[%c0_1, %c0_2] : memref<3x9xf32, #tpu.memory_space<vmem>>, vector<3x9xf32>
    %cst = arith.constant dense<0.000000e+00> : vector<8x9xf32>
    %2 = tpu.matmul %0, %1, %cst {dimension_numbers = #tpu.dot_dimension_numbers<[1], [0], [0], [1], [0, 0, 1, 1], [], []>} : vector<8x3xf32>, vector<3x9xf32>, vector<8x9xf32> -> vector<8x9xf32>
    %c0_3 = arith.constant 0 : index
    %c0_4 = arith.constant 0 : index
    %3 = vector.load %arg3[%c0_3, %c0_4] : memref<1x9xf32, #tpu.memory_space<vmem>>, vector<1x9xf32>
    %4 = vector.broadcast %3 : vector<1x9xf32> to vector<8x9xf32>
    %5 = arith.addf %2, %4 : vector<8x9xf32>
    %c0_5 = arith.constant 0 : index
    %c0_6 = arith.constant 0 : index
    %6 = vector.load %arg4[%c0_5, %c0_6] : memref<9x2xf32, #tpu.memory_space<vmem>>, vector<9x2xf32>
    %cst_7 = arith.constant dense<0.000000e+00> : vector<8x2xf32>
    %7 = tpu.matmul %5, %6, %cst_7 {dimension_numbers = #tpu.dot_dimension_numbers<[1], [0], [0], [1], [0, 0, 1, 1], [], []>} : vector<8x9xf32>, vector<9x2xf32>, vector<8x2xf32> -> vector<8x2xf32>
    %c0_8 = arith.constant 0 : index
    %c0_9 = arith.constant 0 : index
    %8 = vector.load %arg5[%c0_8, %c0_9] : memref<1x2xf32, #tpu.memory_space<vmem>>, vector<1x2xf32>
    %9 = vector.broadcast %8 : vector<1x2xf32> to vector<8x2xf32>
    %10 = arith.addf %7, %9 : vector<8x2xf32>
    %c0_10 = arith.constant 0 : index
    %c0_11 = arith.constant 0 : index
    %11 = vector.load %arg6[%c0_10, %c0_11] : memref<8x2xf32, #tpu.memory_space<vmem>>, vector<8x2xf32>
    tpu.vector_store %arg6[%c0_10, %c0_11], %10 {strides = array<i32>} : memref<8x2xf32, #tpu.memory_space<vmem>>, vector<8x2xf32>,
    return
  }
  func.func @transform_0(%arg0: i32) -> (i32, i32) {
    %c0_i32 = arith.constant 0 : i32
    %c0_i32_0 = arith.constant 0 : i32
    return %arg0, %c0_i32 : i32, i32
  }
  func.func @transform_1(%arg0: i32) -> (i32, i32) {
    %c0_i32 = arith.constant 0 : i32
    %c0_i32_0 = arith.constant 0 : i32
    %c0_i32_1 = arith.constant 0 : i32
    return %c0_i32, %c0_i32_0 : i32, i32
  }
  func.func @transform_2(%arg0: i32) -> (i32, i32) {
    %c0_i32 = arith.constant 0 : i32
    %c0_i32_0 = arith.constant 0 : i32
    %c0_i32_1 = arith.constant 0 : i32
    return %c0_i32, %c0_i32_0 : i32, i32
  }
  func.func @transform_3(%arg0: i32) -> (i32, i32) {
    %c0_i32 = arith.constant 0 : i32
    %c0_i32_0 = arith.constant 0 : i32
    %c0_i32_1 = arith.constant 0 : i32
    return %c0_i32, %c0_i32_0 : i32, i32
  }
  func.func @transform_4(%arg0: i32) -> (i32, i32) {
    %c0_i32 = arith.constant 0 : i32
    %c0_i32_0 = arith.constant 0 : i32
    %c0_i32_1 = arith.constant 0 : i32
    return %c0_i32, %c0_i32_0 : i32, i32
  }
  func.func @transform_5(%arg0: i32) -> (i32, i32) {
    %c0_i32 = arith.constant 0 : i32
    %c0_i32_0 = arith.constant 0 : i32
    return %arg0, %c0_i32 : i32, i32
  }
}

</mosaic_0001>

<bundles_post_ra>
// kernel: net_mia_attack_forward.1
= control target key start
LH: loop header
LB: loop body
LE: loop exit
PB: predicated region body
PF: predicated region fallthrough
CT: control target
= control target key end

     0   :  { %vm33_vm0 = vcmask 1042432   ;;  %vm29_vm1 = vcmask 23552   ;;  %v225_v0 = vmov 0.0   ;;  %vm226_vm2 = vmmov 0   ;;  %s278_s1 = inlined_call_operand.vmem [shape: f32[3,9], index: 1, kind: input, shape index: {}]   ;;  %s279_s0 = inlined_call_operand.vmem [shape: f32[8,3], index: 0, kind: input, shape index: {}]   ;;  %s280_s3 = inlined_call_operand.vmem [shape: f32[9,2], index: 3, kind: input, shape index: {}]   ;;  %s281_s2 = inlined_call_operand.vmem [shape: f32[1,9], index: 2, kind: input, shape index: {}]   ;;  %s282_s4 = inlined_call_operand.vmem [shape: f32[1,2], index: 4, kind: input, shape index: {}]   ;;  %s283_s5 = inlined_call_operand.vmem [shape: f32[8,2], index: 5, kind: output, shape index: {}]  }
   0x1   :  { %211 = vmatprep.subr.mxu0 %v225_v0  ;;  %v21_v1 = vld [vmem:[%s278_s1] sm:$0x7]  ;;  %213 = vmatprep.mubr.msk.f32.mxu0 %vm226_vm2, %v225_v0  ;;  %v108_v3 = vld [vmem:[%s280_s3 + $0x8] sm:$0x1]  ;;  %vm120_vm3 = vcmask 1040384   ;;  %vm116_vm4 = vcmask 72704  }
   0x2   :  { %v20_v2 = vld [vmem:[%s279_s0] sm:$0xff]  ;;  %212 = vmatpush3.msk.msra.mxu0 %vm33_vm0, %v21_v1  ;;  %216 = vmatprep.subr.mxu1 %v225_v0  ;;  %vm194_vm5 = vcmask 15360  }
   0x3   :  { %214 = vmatmul.mubr.msk.f32.vlgmr.msra.gmra.mxu0 %vm29_vm1, %v20_v2  ;;  %220 = vmatprep.mubr.msk.f32.mxu1 %vm226_vm2, %v225_v0  ;;  %v107_v4 = vld [vmem:[%s280_s3] sm:$0xff] }
   0x4   :  { %217 = vmatpush3.msk.msra.mxu1 %vm120_vm3, %v108_v3  ;;  %v200_v5 = vld [vmem:[%s281_s2] ss:$0 sm:$0xff] }
   0x5   :  { %218 = vmatprep.subr.mxu1 %v225_v0  ;;  %v203_v9 = vld [vmem:[%s282_s4] ss:$0 sm:$0xff] }
   0x6   :  { %219 = vmatpush3.msra.mxu1 %v107_v4 }
  0xc3   :  { %v103_v6 = vpop.f32.mrf.mxu0 }
  0xc4   :  { %v104_v7 = vadd.f32 %v200_v5, %v103_v6 }
  0xc5   :  { %v215_v8 = vpop.f32.mrf.mxu0 }
  0xc6   :  { %221 = vmatmul.mubr.msk.f32.vlgmr.msra.gmra.mxu1 %vm116_vm4, %v104_v7 }
 0x186   :  { %v190_v10 = vpop.f32.mrf.mxu1 }
 0x187   :  { %v191_v11 = vadd.f32 %v203_v9, %v190_v10 }
 0x188   :  { %v222_v12 = vpop.f32.mrf.mxu1 }
 0x189   :  { %195 = vst.msk [vmem:[%s283_s5] sm:$0xff] %vm194_vm5, %v191_v11 }

</bundles_post_ra>
